<compile_context>
chip_gen: v5e
topology: v5e:2x2
jax: 0.10.0
libtpu: 0.0.40
codegen_flags: <defaults>
</compile_context>

<pallas_src>
import functools

import jax
import jax.numpy as jnp
from jax.experimental import pallas as pl
from jax.experimental.pallas import tpu as pltpu

LANE = 128


def _round_up(v, m):
    return (v + m - 1) // m * m


def _vmem_limit_bytes():
    """Generation-aware scoped-VMEM limit (v7x ~54 MiB of 64; v5e/v6e capped at 112 MiB)."""
    try:
        cap = int(pltpu.get_tpu_info().vmem_capacity_bytes)
    except Exception:
        cap = 64 * 1024 * 1024  # conservative (v7x-sized) fallback
    return min(int(cap * 0.85), 112 * 1024 * 1024)


def _largest_divisor_tile(n, target, candidates):
    """Largest candidate tile <= target that divides n (candidates sorted descending)."""
    for t in candidates:
        if t <= target and n % t == 0:
            return t
    return candidates[-1]


# ---------------------------------------------------------------------------
# Kernels
# ---------------------------------------------------------------------------
def _feat_kernel(x_ref, w1_ref, out_ref):
    # support1 = x @ W1  (bf16 operands straight from HBM, f32 accumulate, bf16 store)
    out_ref[...] = jnp.dot(
        x_ref[...], w1_ref[...], preferred_element_type=jnp.float32
    ).astype(out_ref.dtype)


def _layer1_kernel(adj_ref, s1_ref, b1_ref, w2_ref, out_ref, acc_ref):
    # acc  += adj(i,k) @ s1(k)                                 (gc1 spmm, K-blocked)
    # last k: h = leaky_relu(acc + b1); out = h @ W2_padded    (gc2 feature transform fused)
    k = pl.program_id(1)

    @pl.when(k == 0)
    def _init():
        acc_ref[...] = jnp.zeros_like(acc_ref)

    acc_ref[...] += jnp.dot(
        adj_ref[...], s1_ref[...], preferred_element_type=jnp.float32
    )

    @pl.when(k == pl.num_programs(1) - 1)
    def _epilogue():
        h = acc_ref[...] + b1_ref[...]
        h = jnp.where(h > 0, h, jnp.float32(0.01) * h)  # leaky_relu, slope 0.01
        # TODO(synk): training-mode dropout (stochastic masking) not implemented; eval semantics.
        out_ref[...] = jnp.dot(
            h.astype(jnp.bfloat16), w2_ref[...], preferred_element_type=jnp.float32
        ).astype(out_ref.dtype)


def _layer2_kernel(adj_ref, s2_ref, b2_ref, out_ref, acc_ref, *, n_class):
    # acc += adj(i,k) @ s2(k); last k: z = acc + b2; masked log_softmax over real classes.
    k = pl.program_id(1)

    @pl.when(k == 0)
    def _init():
        acc_ref[...] = jnp.zeros_like(acc_ref)

    acc_ref[...] += jnp.dot(
        adj_ref[...], s2_ref[...], preferred_element_type=jnp.float32
    )

    @pl.when(k == pl.num_programs(1) - 1)
    def _epilogue():
        z = acc_ref[...] + b2_ref[...]
        col = jax.lax.broadcasted_iota(jnp.int32, z.shape, dimension=1)
        z = jnp.where(col < n_class, z, jnp.float32(-1e30))  # mask padded class lanes
        m = jnp.max(z, axis=1, keepdims=True)
        s = z - m
        lse = jnp.log(jnp.sum(jnp.exp(s), axis=1, keepdims=True))
        out_ref[...] = (s - lse).astype(out_ref.dtype)


# ---------------------------------------------------------------------------
# Wrapper
# ---------------------------------------------------------------------------
def gcn_forward(x, adj, w1, b1, w2, b2, *, row_tile=512, col_tile=512):
    n, n_feat = x.shape
    n_hid = w1.shape[1]
    n_class = w2.shape[1]

    hp = _round_up(n_hid, LANE)    # lane-dense hidden width
    cp = _round_up(n_class, LANE)  # lane-dense class width
    n_pad = _round_up(n, LANE)     # padded node count (rows AND adj columns)

    tm = _largest_divisor_tile(n_pad, row_tile, (1024, 512, 256, 128, 64, 32, 16, 8))
    tk = _largest_divisor_tile(n_pad, col_tile, (2048, 1024, 512, 256, 128))
    grid_rows = n_pad // tm
    grid_k = n_pad // tk

    f32, bf16 = jnp.float32, jnp.bfloat16

    # bf16 MXU operands for the dominant HBM streams; biases / epilogues stay f32.
    if n_pad != n:
        x_b = jnp.zeros((n_pad, n_feat), bf16).at[:n, :].set(x.astype(bf16))
        adj_b = jnp.zeros((n_pad, n_pad), bf16).at[:n, :n].set(adj.astype(bf16))
    else:
        x_b = x.astype(bf16)
        adj_b = adj.astype(bf16)
    # TODO(synk): on v5e/v6e an int8-quantized adj (per-row scale folded into the f32
    # epilogue) would halve the dominant n^2 bytes; kept bf16 here for accuracy.
    w1p = jnp.zeros((n_feat, hp), bf16).at[:, :n_hid].set(w1.astype(bf16))
    b1p = jnp.zeros((1, hp), f32).at[:, :n_hid].set(b1.reshape(1, n_hid).astype(f32))
    w2p = jnp.zeros((hp, cp), bf16).at[:n_hid, :n_class].set(w2.astype(bf16))
    b2p = jnp.zeros((1, cp), f32).at[:, :n_class].set(b2.reshape(1, n_class).astype(f32))

    vmem_limit = _vmem_limit_bytes()
    cparams_1d = pltpu.CompilerParams(
        dimension_semantics=("parallel",), vmem_limit_bytes=vmem_limit)
    cparams_2d = pltpu.CompilerParams(
        dimension_semantics=("parallel", "arbitrary"), vmem_limit_bytes=vmem_limit)

    resident = pl.Buffered(1)  # constant-index operands: no double-buffering

    # --- support1 = x @ W1 (row-tiled, x streamed as bf16) --------------------
    s1 = pl.pallas_call(
        _feat_kernel,
        out_shape=jax.ShapeDtypeStruct((n_pad, hp), bf16),
        grid=(grid_rows,),
        in_specs=[
            pl.BlockSpec((tm, n_feat), lambda i: (i, 0)),
            pl.BlockSpec((n_feat, hp), lambda i: (0, 0), pipeline_mode=resident),
        ],
        out_specs=pl.BlockSpec((tm, hp), lambda i: (i, 0)),
        compiler_params=cparams_1d,
        cost_estimate=pl.CostEstimate(
            flops=2 * n_pad * n_feat * hp,
            transcendentals=0,
            bytes_accessed=n_pad * n_feat * 2 + n_feat * hp * 2 + n_pad * hp * 2,
        ),
    )(x_b, w1p)

    # --- layer 1: support2 = leaky_relu(adj @ s1 + b1) @ W2  (adj streamed, K-blocked)
    s2 = pl.pallas_call(
        _layer1_kernel,
        out_shape=jax.ShapeDtypeStruct((n_pad, cp), bf16),
        grid=(grid_rows, grid_k),
        in_specs=[
            pl.BlockSpec((tm, tk), lambda i, k: (i, k)),        # adj tile (streamed)
            pl.BlockSpec((tk, hp), lambda i, k: (k, 0)),        # support1 K-block
            pl.BlockSpec((1, hp), lambda i, k: (0, 0), pipeline_mode=resident),   # b1
            pl.BlockSpec((hp, cp), lambda i, k: (0, 0), pipeline_mode=resident),  # W2 padded
        ],
        out_specs=pl.BlockSpec((tm, cp), lambda i, k: (i, 0)),
        scratch_shapes=[pltpu.VMEM((tm, hp), jnp.float32)],
        compiler_params=cparams_2d,
        cost_estimate=pl.CostEstimate(
            flops=2 * n_pad * n_pad * hp + 2 * n_pad * hp * cp,
            transcendentals=0,
            bytes_accessed=n_pad * n_pad * 2 + grid_rows * n_pad * hp * 2
                           + hp * cp * 2 + n_pad * cp * 2,
        ),
    )(adj_b, s1, b1p, w2p)

    # --- layer 2: z = adj @ s2 + b2 ; masked log_softmax (K-blocked) ----------
    out_p = pl.pallas_call(
        functools.partial(_layer2_kernel, n_class=n_class),
        out_shape=jax.ShapeDtypeStruct((n_pad, cp), f32),
        grid=(grid_rows, grid_k),
        in_specs=[
            pl.BlockSpec((tm, tk), lambda i, k: (i, k)),        # adj tile (streamed)
            pl.BlockSpec((tk, cp), lambda i, k: (k, 0)),        # support2 K-block
            pl.BlockSpec((1, cp), lambda i, k: (0, 0), pipeline_mode=resident),   # b2
        ],
        out_specs=pl.BlockSpec((tm, cp), lambda i, k: (i, 0)),
        scratch_shapes=[pltpu.VMEM((tm, cp), jnp.float32)],
        compiler_params=cparams_2d,
        cost_estimate=pl.CostEstimate(
            flops=2 * n_pad * n_pad * cp,
            transcendentals=n_pad * cp,
            bytes_accessed=n_pad * n_pad * 2 + grid_rows * n_pad * cp * 2 + n_pad * cp * 4,
        ),
    )(adj_b, s2, b2p)

    # Padded rows / class lanes carry garbage; callers get only the real block.
    return out_p[:n, :n_class]


# ---------------------------------------------------------------------------
# References
# ---------------------------------------------------------------------------
def reference_forward_bf16(x, adj, w1, b1, w2, b2):
    """Mirrors the kernel's mixed precision (bf16 MXU operands, f32 accumulate)."""
    bf = lambda a: a.astype(jnp.bfloat16)
    s1 = jnp.dot(bf(x), bf(w1), preferred_element_type=jnp.float32)
    h = jnp.dot(bf(adj), bf(s1), preferred_element_type=jnp.float32) + b1
    h = jnp.where(h > 0, h, 0.01 * h)
    s2 = jnp.dot(bf(h), bf(w2), preferred_element_type=jnp.float32)
    z = jnp.dot(bf(adj), bf(s2), preferred_element_type=jnp.float32) + b2
    return jax.nn.log_softmax(z, axis=1)


def reference_forward_f32(x, adj, w1, b1, w2, b2):
    h = adj @ (x @ w1) + b1
    h = jnp.where(h > 0, h, 0.01 * h)
    z = adj @ (h @ w2) + b2
    return jax.nn.log_softmax(z, axis=1)


if __name__ == "__main__":
    # Small shapes consistent with the module: N nodes, n_feat -> n_hid -> n_class
    N, n_feat, n_hid, n_class = 256, 64, 32, 8

    key = jax.random.PRNGKey(0)
    k_x, k_adj, k_w1, k_b1, k_w2, k_b2 = jax.random.split(key, 6)

    x = jax.random.normal(k_x, (N, n_feat), dtype=jnp.float32)

    # Symmetric, row-normalized adjacency (with self-loops), deterministic.
    a = (jax.random.uniform(k_adj, (N, N)) < 0.05).astype(jnp.float32)
    a = jnp.maximum(a, a.T) + jnp.eye(N, dtype=jnp.float32)
    adj = a / jnp.sum(a, axis=1, keepdims=True)

    # GraphConvolution parameters (deterministic init; shapes from __init__).
    w1 = jax.random.normal(k_w1, (n_feat, n_hid), dtype=jnp.float32) * 0.2
    b1 = jax.random.normal(k_b1, (n_hid,), dtype=jnp.float32) * 0.1
    w2 = jax.random.normal(k_w2, (n_hid, n_class), dtype=jnp.float32) * 0.2
    b2 = jax.random.normal(k_b2, (n_class,), dtype=jnp.float32) * 0.1

    # Small tiles so the tiny test graph still exercises a pipelined (2, 2) grid.
    out = gcn_forward(x, adj, w1, b1, w2, b2, row_tile=128, col_tile=128)
    out = jax.block_until_ready(out)
    assert out.shape == (N, n_class)

    ref_mixed = reference_forward_bf16(x, adj, w1, b1, w2, b2)
    ref_f32 = reference_forward_f32(x, adj, w1, b1, w2, b2)
    assert jnp.allclose(out, ref_mixed, atol=2e-3, rtol=2e-3), float(
        jnp.max(jnp.abs(out - ref_mixed))
    )
    assert jnp.allclose(out, ref_f32, atol=7e-2, rtol=7e-2), float(
        jnp.max(jnp.abs(out - ref_f32))
    )

    print("KERNEL_OK")
</pallas_src>

<mosaic_0001>
module attributes {stable_mosaic.version = 11 : i64} {
  func.func @_feat_kernel(%arg0: i32, %arg1: memref<128x64xbf16, #tpu.memory_space<vmem>>, %arg2: memref<64x128xbf16, #tpu.memory_space<vmem>>, %arg3: memref<128x128xbf16, #tpu.memory_space<vmem>>) attributes {dimension_semantics = [#tpu.dimension_semantics<parallel>], iteration_bounds = array<i64: 2>, scalar_prefetch = 0 : i64, scratch_operands = 0 : i64, tpu.core_type = #tpu.core_type<tc>, window_params = [{transform_indices = @transform_0, window_bounds = array<i64: 128, 64>}, {pipeline_mode = #tpu.pipeline_mode<synchronous>, transform_indices = @transform_1, window_bounds = array<i64: 64, 128>}, {transform_indices = @transform_2, window_bounds = array<i64: 128, 128>}]} {
    %c0 = arith.constant 0 : index
    %c0_0 = arith.constant 0 : index
    %0 = vector.load %arg1[%c0, %c0_0] : memref<128x64xbf16, #tpu.memory_space<vmem>>, vector<128x64xbf16>
    %c0_1 = arith.constant 0 : index
    %c0_2 = arith.constant 0 : index
    %1 = vector.load %arg2[%c0_1, %c0_2] : memref<64x128xbf16, #tpu.memory_space<vmem>>, vector<64x128xbf16>
    %cst = arith.constant dense<0.000000e+00> : vector<128x128xf32>
    %2 = tpu.matmul %0, %1, %cst {dimension_numbers = #tpu.dot_dimension_numbers<[1], [0], [0], [1], [0, 0, 1, 1], [], []>} : vector<128x64xbf16>, vector<64x128xbf16>, vector<128x128xf32> -> vector<128x128xf32>
    %3 = arith.truncf %2 : vector<128x128xf32> to vector<128x128xbf16>
    %c0_3 = arith.constant 0 : index
    %c0_4 = arith.constant 0 : index
    %4 = vector.load %arg3[%c0_3, %c0_4] : memref<128x128xbf16, #tpu.memory_space<vmem>>, vector<128x128xbf16>
    tpu.vector_store %arg3[%c0_3, %c0_4], %3 {strides = array<i32>} : memref<128x128xbf16, #tpu.memory_space<vmem>>, vector<128x128xbf16>,
    return
  }
  func.func @transform_0(%arg0: i32) -> (i32, i32) {
    %c0_i32 = arith.constant 0 : i32
    %c0_i32_0 = arith.constant 0 : i32
    return %arg0, %c0_i32 : i32, i32
  }
  func.func @transform_1(%arg0: i32) -> (i32, i32) {
    %c0_i32 = arith.constant 0 : i32
    %c0_i32_0 = arith.constant 0 : i32
    %c0_i32_1 = arith.constant 0 : i32
    return %c0_i32, %c0_i32_0 : i32, i32
  }
  func.func @transform_2(%arg0: i32) -> (i32, i32) {
    %c0_i32 = arith.constant 0 : i32
    %c0_i32_0 = arith.constant 0 : i32
    return %arg0, %c0_i32 : i32, i32
  }
}

</mosaic_0001>

<bundles_post_ra>
// kernel: tpu_custom_call.1
= control target key start
LH: loop header
LB: loop body
LE: loop exit
PB: predicated region body
PF: predicated region fallthrough
CT: control target
= control target key end

     0   :  { %7 = vsyncpa [#allocation3], 0  ;;  %s788_s0 = inlined_call_operand.vmem [shape: bf16[256,64], index: 0, kind: input, shape index: {}]   ;;  %s789_s1 = inlined_call_operand.vmem [shape: bf16[64,128], index: 1, kind: input, shape index: {}]   ;;  %s790_s2 = inlined_call_operand.hbm [shape: bf16[256,128], index: 2, kind: output, shape index: {}]  }
   0x1   :  { %9 = vsyncpa [#allocation3 + $0x1], 0  ;;  %s680_s9 = smov 0   ;;  %s682_s10 = smov 0  }
   0x2   :  { %s684_s11 = smov 0   ;;  %s686_s12 = smov 0  }
   0x3 LB: > { %s701_s13 = sadd.s32 4294967295, %s661_s12   ;;  %s418_s14 = sadd.s32 4294967294, %s661_s12   ;;  %s661_s12 = sphi %s686_s12, %s796_s12   ;;  %s657_s11 = sphi %s684_s11, %s795_s11   ;;  %s653_s10 = sphi %s682_s10, %s794_s10   ;;  %s649_s9 = sphi %s680_s9, %s793_s9  }
   0x4   : > { %s705_s15 = sadd.s32 1, %s661_s12   ;;  %s69_s16 = sadd.s32 1, %s657_s11 }
   0x5   : > { %s66_s17 = ssub.s32 %s661_s12, %s705_s15  ;;  %p79_p0 = scmp.ne.s32.totalorder %s657_s11, %s653_s10 }
   0x6   : > { %p67_p1 = scmp.eq.s32.totalorder %s66_s17, 0  ;;  %p80_p2 = scmp.eq.s32.totalorder %s701_s13, 1 }
   0x7   : > { %p85_p3 = scmp.ne.s32.totalorder %s653_s10, %s649_s9  ;;  %p86_p4 = scmp.eq.s32.totalorder %s418_s14, 1 }
   0x8   : > { %s716_s18 = scalar_select %p67_p1, %s657_s11, %s69_s16  }
   0x9   : > { %p718_p5 = por %p80_p2, %p79_p0  ;;  %p722_p6 = por %p86_p4, %p85_p3 }
   0xa   : > { %p421_p7 = scmp.ge.s32.totalorder %s661_s12, 1  ;;  %p116_p8 = scmp.lt.s32.totalorder %s661_s12, 3 }
   0xc   : > { %p117_p9 = pnand %p421_p7, %p116_p8 }
   0xd   : > { %s423_s23 = sshll.u32 (!%p117_p9), %s701_s13, 4  ;;  %s135_s6 = sand.u32 (!%p117_p9), 1, %s653_s10  }
   0xe   : > { %120 = sbr.rel (%p117_p9) target bundleno = 199 (0xc7), region = 28  ;;  %p139_p10 = scmp.lt.s32.totalorder (!%p117_p9), %s423_s23, 31 }
   0xf   : > { %s422_s7 = sshll.u32 (!%p117_p9), %s135_s6, 6  ;;  %s498_s14 = sshll.u32 (!%p117_p9), %s701_s13, 6 }
  0x10   : > { %s137_s8 = scalar_lea.vmem (!%p117_p9), [#allocation2], %s422_s7  ;;  %s352_s21 = scalar_lea.hbm (!%p117_p9), %s790_s2, %s498_s14 }
  0x11   : > { %s353_s22 = sshll.u32 (!%p117_p9), %s137_s8, 4  ;;  %s341_s13 = scalar_lea.sflag (!%p117_p9), [#allocation3], %s135_s6  ;;  %s354_s22 = int_to_ptr.vmem [resolvable:$true] %s353_s22 }
  0x13   : > { %v497_v0 = vld [vmem:[%s789_s1 + $0x18] sm:$0xff]  ;;  %v496_v1 = vld [vmem:[%s789_s1 + $0x10] sm:$0xff]  ;;  %s798_s23 = smov (!%p139_p10, %s423_s23), 31  ;;  %v495_v2 = vld [vmem:[%s789_s1 + $0x8] sm:$0xff]  ;;  %vm234_vm0 = vcmask 523264  }
  0x14   : > { %263 = vmatpush.bf16.msra.mxu0 %v497_v0  ;;  %546 = vmatpush.bf16.msra.mxu1 %v497_v0  ;;  %s424_s28 = sshll.u32 %s798_s23, 2  ;;  %v494_v3 = vld [vmem:[%s789_s1] sm:$0xff]  ;;  %s355_s23 = sshll.u32 %s352_s21, 4  ;;  %s356_s23 = int_to_ptr.hbm [resolvable:$true] %s355_s23 }
  0x15   : > { %547 = vmatpush.bf16.msra.mxu2 %v497_v0  ;;  %548 = vmatpush.bf16.msra.mxu3 %v497_v0  ;;  %s142_s5 = scalar_lea.vmem %s788_s0, %s424_s28  ;;  %s613_s24 = sshra.s32 %s356_s23, 4  ;;  %s614_s24 = int_to_ptr.hbm [resolvable:$true] %s613_s24 }
  0x16   : > { %v486_v4 = vld [vmem:[%s142_s5] sm:$0xff]  ;;  %v488_v5 = vld [vmem:[%s142_s5 + $0x10] sm:$0xff]  ;;  %v487_v8 = vld [vmem:[%s142_s5 + $0x8] sm:$0xff]  ;;  %s615_s25 = scalar_lea.hbm %s614_s24, 64  ;;  %s619_s28 = scalar_lea.hbm %s790_s2, 128 }
  0x17   : > { %v490_v6 = vld [vmem:[%s142_s5 + $0x20] sm:$0xff]  ;;  %v492_v7 = vld [vmem:[%s142_s5 + $0x30] sm:$0xff]  ;;  %v489_v9 = vld [vmem:[%s142_s5 + $0x18] sm:$0xff]  ;;  %p616_p11 = scmp.ne.s32.totalorder %s614_s24, %s615_s25  ;;  %p620_p0 = scmp.lt.s32.totalorder %s614_s24, %s790_s2 }
  0x18   : > { %264 = vmatpush.bf16.msra.mxu0 %v496_v1  ;;  %549 = vmatpush.bf16.msra.mxu1 %v496_v1  ;;  %v491_v10 = vld [vmem:[%s142_s5 + $0x28] sm:$0xff]  ;;  %v493_v11 = vld [vmem:[%s142_s5 + $0x38] sm:$0xff]  ;;  %p621_p1 = scmp.lt.s32.totalorder %s619_s28, %s615_s25 }
  0x19   : > { %550 = vmatpush.bf16.msra.mxu2 %v496_v1  ;;  %551 = vmatpush.bf16.msra.mxu3 %v496_v1  ;;  %p617_p12 = pnand %p616_p11, %p718_p5 }
  0x1a   : > { %p622_p2 = por %p621_p1, %p620_p0 }
  0x1b   : > { %p618_p13 = pneg %p617_p12 }
  0x1c   : > { %265 = vmatpush.bf16.msra.mxu0 %v495_v2  ;;  %552 = vmatpush.bf16.msra.mxu1 %v495_v2 }
  0x1d   : > { %553 = vmatpush.bf16.msra.mxu2 %v495_v2  ;;  %554 = vmatpush.bf16.msra.mxu3 %v495_v2  ;;  %p623_p3 = pnand %p622_p2, %p618_p13 }
  0x20   : > { %266 = vmatpush.bf16.msra.mxu0 %v494_v3  ;;  %555 = vmatpush.bf16.msra.mxu1 %v494_v3 }
  0x21   : > { %556 = vmatpush.bf16.msra.mxu2 %v494_v3  ;;  %557 = vmatpush.bf16.msra.mxu3 %v494_v3 }
  0x23   : > { %473 = vmatmul.msk.bf16.vlgmr.msra.gmra.mxu0 %vm234_vm0, %v486_v4  ;;  %475 = vmatmul.msk.bf16.vlgmr.msra.gmra.mxu1 %vm234_vm0, %v488_v5 }
  0x24   : > { %477 = vmatmul.msk.bf16.vlgmr.msra.gmra.mxu2 %vm234_vm0, %v490_v6  ;;  %479 = vmatmul.msk.bf16.vlgmr.msra.gmra.mxu3 %vm234_vm0, %v492_v7 }
  0x33   : > { %474 = vmatmul.msk.bf16.gmra.mxu0 %vm234_vm0, %v487_v8  ;;  %476 = vmatmul.msk.bf16.gmra.mxu1 %vm234_vm0, %v489_v9 }
  0x34   : > { %478 = vmatmul.msk.bf16.gmra.mxu2 %vm234_vm0, %v491_v10  ;;  %480 = vmatmul.msk.bf16.gmra.mxu3 %vm234_vm0, %v493_v11 }
  0xa0   : > { %v268_v12 = vpop.f32.mrf.mxu0  ;;  %v278_v13 = vpop.f32.mrf.mxu1 }
  0xa7   : > { %v288_v14 = vpop.f32.mrf.mxu2  ;;  %v298_v15 = vpop.f32.mrf.mxu3 }
  0xa8   : > { %v270_v16 = vpop.f32.mrf.mxu0  ;;  %v280_v17 = vpop.f32.mrf.mxu1 }
  0xa9   : > { %v502_v18 = vpack.c.bf16 %v270_v16, %v268_v12  ;;  %v512_v19 = vpack.c.bf16 %v280_v17, %v278_v13 }
  0xab   : > { %503 = vst [vmem:[%s137_s8] sm:$0xff] %v502_v18  }
  0xac   : > { %540 = vst [vmem:[%s137_s8 + $0x10] sm:$0xff] %v512_v19  }
  0xaf   : > { %v290_v20 = vpop.f32.mrf.mxu2  ;;  %v300_v21 = vpop.f32.mrf.mxu3 }
  0xb0   : > { %v522_v22 = vpack.c.bf16 %v290_v20, %v288_v14  ;;  %v532_v23 = vpack.c.bf16 %v300_v21, %v298_v15  ;;  %v273_v24 = vpop.f32.mrf.mxu0  ;;  %v283_v25 = vpop.f32.mrf.mxu1 }
  0xb2   : > { %542 = vst [vmem:[%s137_s8 + $0x20] sm:$0xff] %v522_v22  }
  0xb3   : > { %544 = vst [vmem:[%s137_s8 + $0x30] sm:$0xff] %v532_v23  }
  0xb7   : > { %v293_v26 = vpop.f32.mrf.mxu2  ;;  %v303_v27 = vpop.f32.mrf.mxu3 }
  0xb8   : > { %v275_v28 = vpop.f32.mrf.mxu0  ;;  %v285_v29 = vpop.f32.mrf.mxu1 }
  0xb9   : > { %v507_v30 = vpack.c.bf16 %v275_v28, %v273_v24  ;;  %v517_v31 = vpack.c.bf16 %v285_v29, %v283_v25 }
  0xbb   : > { %539 = vst [vmem:[%s137_s8 + $0x8] sm:$0xff] %v507_v30  }
  0xbc   : > { %541 = vst [vmem:[%s137_s8 + $0x18] sm:$0xff] %v517_v31  }
  0xbf   : > { %v295_v32 = vpop.f32.mrf.mxu2  ;;  %v305_v33 = vpop.f32.mrf.mxu3 }
  0xc0   : > { %v527_v34 = vpack.c.bf16 %v295_v32, %v293_v26  ;;  %v537_v35 = vpack.c.bf16 %v305_v33, %v303_v27 }
  0xc2   : > { %543 = vst [vmem:[%s137_s8 + $0x28] sm:$0xff] %v527_v34  }
  0xc3   : > { %545 = vst [vmem:[%s137_s8 + $0x38] sm:$0xff] %v537_v35  }
  0xc4   : > { %626 = shalt.err (!%p623_p3)
}
  0xc5   : > { %s663_s3 = smov 64   ;;  %s664_s4 = smov 4  }
  0xc6   : > { %558 = dma.vmem_to_hbm [thread:$0]  (%p718_p5), %s354_s22, 1024, %s356_s23, %s341_s13, %s663_s3, %s663_s3, %s664_s4  }
  0xc7 PF: > { %p564_p4 = scmp.ge.s32.totalorder %s661_s12, 2  ;;  %s370_s5 = sand.u32 1, %s649_s9  }
  0xc8   : > { %s371_s6 = scalar_lea.sflag [#allocation3], %s370_s5 }
  0xc9   : > { %p561_p7 = pnand %p564_p4, %p722_p6 }
  0xcb   : > { %p562_p8 = pneg %p561_p7 }
  0xcd   : > { %644 = dma.done.wait (%p562_p8), %s371_s6, 1024  }
  0xce   : > { %646 = vsyncadd (%p562_p8), %s371_s6, 4294966272  ;;  %p12_p9 = scmp.ge.s32.totalorder %s705_s15, 4   ;;  %s793_s9 = smov %s653_s10 }
  0xcf   : > { %s794_s10 = smov %s657_s11  ;;  %s795_s11 = smov %s716_s18 }
  0xd0   : > { %s796_s12 = smov %s705_s15  ;;  %14 = sbr.rel (!%p12_p9) target bundleno = 3 (0x3), region = 63 }
  0xd5   :  { %377 = vsyncpa [#allocation3], 1 }
  0xd6   :  { %379 = vsyncpa [#allocation3 + $0x1], 1 }

</bundles_post_ra>
